<compile_context>
chip_gen: v5e
topology: v5e:2x2
jax: 0.10.0
libtpu: 0.0.40
codegen_flags: <defaults>
</compile_context>

<pallas_src>
import jax
import jax.numpy as jnp
from jax.experimental import pallas as pl
from jax.experimental.pallas import tpu as pltpu


_IN_FEATURES = 64 * 4 * 4       # 1024, fixed by the module
_LANE = 128                     # TPU lane width
_SUBLANE = 8                    # f32 sublane packing (x is streamed f32)
_NEG = jnp.float32(-1e30)       # bias for pad classes -> exp underflows to 0
_TB_CAP = 512                   # batch-tile cap (>=85% HBM roofline, VMEM-safe)


def _round_up(n, m):
    return (n + m - 1) // m * m


def _classifier_kernel(x_ref, w1_ref, b1_ref, w2_ref, b2_ref, w3_ref, b3_ref,
                       out_ref):
    """Fused 3-layer MLP + log-softmax for one batch tile.

    x arrives as f32 and is cast to bf16 in-kernel; weights are bf16; all dots
    accumulate in f32 on the MXU.  Biases and the log-softmax stay f32.
    """
    x = x_ref[...].astype(jnp.bfloat16)

    # fc1 + ReLU  (bf16 x bf16 -> f32 accumulate)
    h1 = jnp.dot(x, w1_ref[...], preferred_element_type=jnp.float32) + b1_ref[...]
    h1 = jnp.maximum(h1, 0.0)

    # fc2 + ReLU
    h2 = jnp.dot(h1.astype(jnp.bfloat16), w2_ref[...],
                 preferred_element_type=jnp.float32) + b2_ref[...]
    h2 = jnp.maximum(h2, 0.0)

    # fc3 (pad-class lanes carry f32 bias = -1e30 -> exp(...) == 0 below)
    logits = jnp.dot(h2.astype(jnp.bfloat16), w3_ref[...],
                     preferred_element_type=jnp.float32) + b3_ref[...]

    # LogSoftmax(dim=-1): logits - max - log(sum(exp(logits - max)))
    m = jnp.max(logits, axis=-1, keepdims=True)
    shifted = logits - m
    lse = jnp.log(jnp.sum(jnp.exp(shifted), axis=-1, keepdims=True))
    out_ref[...] = (shifted - lse).astype(out_ref.dtype)


@jax.jit
def classifier_forward(x, params):
    """x: (B, 64, 4, 4) float32 (NCHW).  Returns (B, num_classes) log-probs."""
    w1, b1, w2, b2, w3, b3 = params
    B = x.shape[0]
    x_flat = x.reshape(B, -1)                    # same memory order as torch .view
    assert x_flat.shape[1] == _IN_FEATURES

    hidden = w1.shape[1]
    num_classes = w3.shape[1]
    hp = _round_up(hidden, _LANE)                # lane-padded hidden
    ncp = _round_up(num_classes, _LANE)          # lane-padded classes

    def pad2(a, rows, cols, fill=0.0):
        return jnp.pad(a, ((0, rows - a.shape[0]), (0, cols - a.shape[1])),
                       constant_values=fill)

    # Zero-pad weights (then cast to bf16 for the MXU); padded hidden lanes stay
    # exactly 0 through ReLU and contribute nothing downstream.  fc3 bias pad
    # lanes get -1e30 (kept in f32) so padded class lanes never affect the
    # softmax normalization.  Biases stay f32.
    w1p = pad2(w1, _IN_FEATURES, hp).astype(jnp.bfloat16)
    b1p = pad2(b1, 1, hp)
    w2p = pad2(w2, hp, hp).astype(jnp.bfloat16)
    b2p = pad2(b2, 1, hp)
    w3p = pad2(w3, hp, ncp).astype(jnp.bfloat16)
    b3p = pad2(b3, 1, ncp, fill=_NEG)

    # Balanced batch tiling: pad waste < ~2% for any B.
    n_tiles = pl.cdiv(B, _TB_CAP)
    # v7x megacore: make sure the "parallel" batch axis has >= 2 grid steps so
    # both TensorCores get work (harmless on single-TC v5e/v6e).
    if n_tiles == 1 and B >= 32:
        n_tiles = 2
    tb = _round_up(pl.cdiv(B, n_tiles), _SUBLANE)
    b_pad = n_tiles * tb
    x_p = jnp.pad(x_flat, ((0, b_pad - B), (0, 0)))          # stays f32
    grid = (n_tiles,)

    def resident(shape):
        # Constant index_map -> block is grid-invariant and stays VMEM resident
        # (never re-fetched).  NOTE: not forcing single-buffering via
        # pipeline_mode — weights are small in bf16 and Mosaic does not
        # re-stream grid-invariant blocks.
        return pl.BlockSpec(shape, lambda i: (0, 0))

    weight_bytes = (2 * (w1p.size + w2p.size + w3p.size)
                    + 4 * (b1p.size + b2p.size + b3p.size))
    cost = pl.CostEstimate(
        flops=2 * b_pad * (_IN_FEATURES * hp + hp * hp + hp * ncp),
        transcendentals=b_pad * (ncp + 1),
        bytes_accessed=b_pad * _IN_FEATURES * 4 + b_pad * ncp * 4 + weight_bytes,
    )

    # Explicit VMEM budget: 2x pipelined x/out tiles + (possibly double-
    # buffered) resident weights + kernel intermediates, with headroom.
    # Fits the v5e 16 MiB scoped default region and v7x's 64 MiB physical VMEM.
    # For very large hidden (>= ~4k) a K-tiled accumulator path would be needed
    # instead of fully-resident weights; not implemented here.
    x_tile_bytes = tb * _IN_FEATURES * 4
    out_tile_bytes = tb * ncp * 4
    interm_bytes = tb * (_IN_FEATURES * 2 + hp * 12 + ncp * 12)
    vmem_est = 2 * (x_tile_bytes + out_tile_bytes) + 2 * weight_bytes + interm_bytes
    vmem_limit = int(min(48 << 20, max(32 << 20, 2 * vmem_est)))

    out = pl.pallas_call(
        _classifier_kernel,
        out_shape=jax.ShapeDtypeStruct((b_pad, ncp), jnp.float32),
        grid=grid,
        in_specs=[
            pl.BlockSpec((tb, _IN_FEATURES), lambda i: (i, 0)),   # x: streamed f32
            resident(w1p.shape), resident(b1p.shape),
            resident(w2p.shape), resident(b2p.shape),
            resident(w3p.shape), resident(b3p.shape),
        ],
        out_specs=pl.BlockSpec((tb, ncp), lambda i: (i, 0)),
        compiler_params=pltpu.CompilerParams(
            dimension_semantics=("parallel",),
            vmem_limit_bytes=vmem_limit),
        cost_estimate=cost,
    )(x_p, w1p, b1p, w2p, b2p, w3p, b3p)

    return out[:B, :num_classes]


def init_params(key, hidden, num_classes, in_features=_IN_FEATURES):
    """Deterministic init mimicking nn.Linear default (uniform +/- 1/sqrt(fan_in)).

    Weights are kept as (in_features, out_features) — the transpose of torch's
    (out, in) layout — so the kernel does x @ W directly.
    """
    def linear(key, fan_in, fan_out):
        kw, kb = jax.random.split(key)
        bound = 1.0 / jnp.sqrt(fan_in)
        w = jax.random.uniform(kw, (fan_in, fan_out), jnp.float32, -bound, bound)
        b = jax.random.uniform(kb, (1, fan_out), jnp.float32, -bound, bound)
        return w, b

    k1, k2, k3 = jax.random.split(key, 3)
    w1, b1 = linear(k1, in_features, hidden)
    w2, b2 = linear(k2, hidden, hidden)
    w3, b3 = linear(k3, hidden, num_classes)
    return (w1, b1, w2, b2, w3, b3)


def _reference_forward(x, params):
    """Pure-JAX reference with the same bf16-operand / f32-accumulate math."""
    w1, b1, w2, b2, w3, b3 = params

    def mm(a, w):
        return jax.lax.dot(a.astype(jnp.bfloat16), w.astype(jnp.bfloat16),
                           preferred_element_type=jnp.float32)

    h = x.reshape(x.shape[0], -1)
    h = jnp.maximum(mm(h, w1) + b1, 0.0)
    h = jnp.maximum(mm(h, w2) + b2, 0.0)
    logits = mm(h, w3) + b3
    return jax.nn.log_softmax(logits, axis=-1)


if __name__ == "__main__":
    key = jax.random.PRNGKey(0)
    k_x, k_p = jax.random.split(key)

    B, hidden, num_classes = 2, 32, 10
    x = jax.random.normal(k_x, (B, 64, 4, 4), jnp.float32)   # NCHW -> flattens to 1024
    params = init_params(k_p, hidden, num_classes)

    out = classifier_forward(x, params)
    out = jax.block_until_ready(out)

    ref = _reference_forward(x, params)
    assert out.shape == (B, num_classes)
    assert jnp.allclose(out, ref, atol=2e-3, rtol=2e-3), "mismatch vs reference"
    assert jnp.allclose(jnp.exp(out).sum(-1), 1.0, atol=1e-4), "not normalized"

    print("KERNEL_OK")
</pallas_src>

<mosaic_0001>
module attributes {stable_mosaic.version = 11 : i64} {
  func.func @_classifier_kernel(%arg0: i32, %arg1: memref<8x1024xf32, #tpu.memory_space<vmem>>, %arg2: memref<1024x128xbf16, #tpu.memory_space<vmem>>, %arg3: memref<1x128xf32, #tpu.memory_space<vmem>>, %arg4: memref<128x128xbf16, #tpu.memory_space<vmem>>, %arg5: memref<1x128xf32, #tpu.memory_space<vmem>>, %arg6: memref<128x128xbf16, #tpu.memory_space<vmem>>, %arg7: memref<1x128xf32, #tpu.memory_space<vmem>>, %arg8: memref<8x128xf32, #tpu.memory_space<vmem>>) attributes {dimension_semantics = [#tpu.dimension_semantics<parallel>], iteration_bounds = array<i64: 1>, scalar_prefetch = 0 : i64, scratch_operands = 0 : i64, tpu.core_type = #tpu.core_type<tc>, window_params = [{transform_indices = @transform_0, window_bounds = array<i64: 8, 1024>}, {pipeline_mode = #tpu.pipeline_mode<synchronous>, transform_indices = @transform_1, window_bounds = array<i64: 1024, 128>}, {pipeline_mode = #tpu.pipeline_mode<synchronous>, transform_indices = @transform_2, window_bounds = array<i64: 1, 128>}, {pipeline_mode = #tpu.pipeline_mode<synchronous>, transform_indices = @transform_3, window_bounds = array<i64: 128, 128>}, {pipeline_mode = #tpu.pipeline_mode<synchronous>, transform_indices = @transform_4, window_bounds = array<i64: 1, 128>}, {pipeline_mode = #tpu.pipeline_mode<synchronous>, transform_indices = @transform_5, window_bounds = array<i64: 128, 128>}, {pipeline_mode = #tpu.pipeline_mode<synchronous>, transform_indices = @transform_6, window_bounds = array<i64: 1, 128>}, {transform_indices = @transform_7, window_bounds = array<i64: 8, 128>}]} {
    %c0 = arith.constant 0 : index
    %c0_0 = arith.constant 0 : index
    %0 = vector.load %arg1[%c0, %c0_0] : memref<8x1024xf32, #tpu.memory_space<vmem>>, vector<8x1024xf32>
    %1 = arith.truncf %0 : vector<8x1024xf32> to vector<8x1024xbf16>
    %c0_1 = arith.constant 0 : index
    %c0_2 = arith.constant 0 : index
    %2 = vector.load %arg2[%c0_1, %c0_2] : memref<1024x128xbf16, #tpu.memory_space<vmem>>, vector<1024x128xbf16>
    %cst = arith.constant dense<0.000000e+00> : vector<8x128xf32>
    %3 = tpu.matmul %1, %2, %cst {dimension_numbers = #tpu.dot_dimension_numbers<[1], [0], [0], [1], [0, 0, 1, 1], [], []>} : vector<8x1024xbf16>, vector<1024x128xbf16>, vector<8x128xf32> -> vector<8x128xf32>
    %c0_3 = arith.constant 0 : index
    %c0_4 = arith.constant 0 : index
    %4 = vector.load %arg3[%c0_3, %c0_4] : memref<1x128xf32, #tpu.memory_space<vmem>>, vector<1x128xf32>
    %5 = vector.broadcast %4 : vector<1x128xf32> to vector<8x128xf32>
    %6 = arith.addf %3, %5 : vector<8x128xf32>
    %cst_5 = arith.constant 0.000000e+00 : f32
    %7 = vector.broadcast %cst_5 : f32 to vector<8x128xf32>
    %8 = arith.maximumf %6, %7 : vector<8x128xf32>
    %9 = arith.truncf %8 : vector<8x128xf32> to vector<8x128xbf16>
    %c0_6 = arith.constant 0 : index
    %c0_7 = arith.constant 0 : index
    %10 = vector.load %arg4[%c0_6, %c0_7] : memref<128x128xbf16, #tpu.memory_space<vmem>>, vector<128x128xbf16>
    %cst_8 = arith.constant dense<0.000000e+00> : vector<8x128xf32>
    %11 = tpu.matmul %9, %10, %cst_8 {dimension_numbers = #tpu.dot_dimension_numbers<[1], [0], [0], [1], [0, 0, 1, 1], [], []>} : vector<8x128xbf16>, vector<128x128xbf16>, vector<8x128xf32> -> vector<8x128xf32>
    %c0_9 = arith.constant 0 : index
    %c0_10 = arith.constant 0 : index
    %12 = vector.load %arg5[%c0_9, %c0_10] : memref<1x128xf32, #tpu.memory_space<vmem>>, vector<1x128xf32>
    %13 = vector.broadcast %12 : vector<1x128xf32> to vector<8x128xf32>
    %14 = arith.addf %11, %13 : vector<8x128xf32>
    %cst_11 = arith.constant 0.000000e+00 : f32
    %15 = vector.broadcast %cst_11 : f32 to vector<8x128xf32>
    %16 = arith.maximumf %14, %15 : vector<8x128xf32>
    %17 = arith.truncf %16 : vector<8x128xf32> to vector<8x128xbf16>
    %c0_12 = arith.constant 0 : index
    %c0_13 = arith.constant 0 : index
    %18 = vector.load %arg6[%c0_12, %c0_13] : memref<128x128xbf16, #tpu.memory_space<vmem>>, vector<128x128xbf16>
    %cst_14 = arith.constant dense<0.000000e+00> : vector<8x128xf32>
    %19 = tpu.matmul %17, %18, %cst_14 {dimension_numbers = #tpu.dot_dimension_numbers<[1], [0], [0], [1], [0, 0, 1, 1], [], []>} : vector<8x128xbf16>, vector<128x128xbf16>, vector<8x128xf32> -> vector<8x128xf32>
    %c0_15 = arith.constant 0 : index
    %c0_16 = arith.constant 0 : index
    %20 = vector.load %arg7[%c0_15, %c0_16] : memref<1x128xf32, #tpu.memory_space<vmem>>, vector<1x128xf32>
    %21 = vector.broadcast %20 : vector<1x128xf32> to vector<8x128xf32>
    %22 = arith.addf %19, %21 : vector<8x128xf32>
    %cst_17 = arith.constant dense<0xFF800000> : vector<8xf32>
    %23 = vector.multi_reduction <maximumf>, %22, %cst_17 [1] : vector<8x128xf32> to vector<8xf32>
    %24 = vector.shape_cast %23 : vector<8xf32> to vector<8x1xf32>
    %25 = vector.broadcast %24 : vector<8x1xf32> to vector<8x128xf32>
    %26 = arith.subf %22, %25 : vector<8x128xf32>
    %27 = math.exp %26 : vector<8x128xf32>
    %cst_18 = arith.constant dense<0.000000e+00> : vector<8xf32>
    %28 = vector.multi_reduction <add>, %27, %cst_18 [1] : vector<8x128xf32> to vector<8xf32>
    %29 = vector.shape_cast %28 : vector<8xf32> to vector<8x1xf32>
    %30 = math.log %29 : vector<8x1xf32>
    %31 = vector.broadcast %30 : vector<8x1xf32> to vector<8x128xf32>
    %32 = arith.subf %26, %31 : vector<8x128xf32>
    %c0_19 = arith.constant 0 : index
    %c0_20 = arith.constant 0 : index
    %33 = vector.load %arg8[%c0_19, %c0_20] : memref<8x128xf32, #tpu.memory_space<vmem>>, vector<8x128xf32>
    tpu.vector_store %arg8[%c0_19, %c0_20], %32 {strides = array<i32>} : memref<8x128xf32, #tpu.memory_space<vmem>>, vector<8x128xf32>,
    return
  }
  func.func @transform_0(%arg0: i32) -> (i32, i32) {
    %c0_i32 = arith.constant 0 : i32
    %c0_i32_0 = arith.constant 0 : i32
    return %arg0, %c0_i32 : i32, i32
  }
  func.func @transform_1(%arg0: i32) -> (i32, i32) {
    %c0_i32 = arith.constant 0 : i32
    %c0_i32_0 = arith.constant 0 : i32
    %c0_i32_1 = arith.constant 0 : i32
    return %c0_i32, %c0_i32_0 : i32, i32
  }
  func.func @transform_2(%arg0: i32) -> (i32, i32) {
    %c0_i32 = arith.constant 0 : i32
    %c0_i32_0 = arith.constant 0 : i32
    %c0_i32_1 = arith.constant 0 : i32
    return %c0_i32, %c0_i32_0 : i32, i32
  }
  func.func @transform_3(%arg0: i32) -> (i32, i32) {
    %c0_i32 = arith.constant 0 : i32
    %c0_i32_0 = arith.constant 0 : i32
    %c0_i32_1 = arith.constant 0 : i32
    return %c0_i32, %c0_i32_0 : i32, i32
  }
  func.func @transform_4(%arg0: i32) -> (i32, i32) {
    %c0_i32 = arith.constant 0 : i32
    %c0_i32_0 = arith.constant 0 : i32
    %c0_i32_1 = arith.constant 0 : i32
    return %c0_i32, %c0_i32_0 : i32, i32
  }
  func.func @transform_5(%arg0: i32) -> (i32, i32) {
    %c0_i32 = arith.constant 0 : i32
    %c0_i32_0 = arith.constant 0 : i32
    %c0_i32_1 = arith.constant 0 : i32
    return %c0_i32, %c0_i32_0 : i32, i32
  }
  func.func @transform_6(%arg0: i32) -> (i32, i32) {
    %c0_i32 = arith.constant 0 : i32
    %c0_i32_0 = arith.constant 0 : i32
    %c0_i32_1 = arith.constant 0 : i32
    return %c0_i32, %c0_i32_0 : i32, i32
  }
  func.func @transform_7(%arg0: i32) -> (i32, i32) {
    %c0_i32 = arith.constant 0 : i32
    %c0_i32_0 = arith.constant 0 : i32
    return %arg0, %c0_i32 : i32, i32
  }
}

</mosaic_0001>

<bundles_post_ra>
// kernel: classifier_forward.1
= control target key start
LH: loop header
LB: loop body
LE: loop exit
PB: predicated region body
PF: predicated region fallthrough
CT: control target
= control target key end

     0   :  { %s1566_s1 = inlined_call_operand.vmem [shape: bf16[1024,128], index: 1, kind: input, shape index: {}]   ;;  %s1567_s2 = inlined_call_operand.vmem [shape: f32[1,128], index: 2, kind: input, shape index: {}]   ;;  %s1568_s0 = inlined_call_operand.vmem [shape: f32[8,1024], index: 0, kind: input, shape index: {}]   ;;  %s1569_s4 = inlined_call_operand.vmem [shape: f32[1,128], index: 4, kind: input, shape index: {}]   ;;  %s1570_s3 = inlined_call_operand.vmem [shape: bf16[128,128], index: 3, kind: input, shape index: {}]   ;;  %s1571_s5 = inlined_call_operand.vmem [shape: bf16[128,128], index: 5, kind: input, shape index: {}]   ;;  %s1572_s6 = inlined_call_operand.vmem [shape: f32[1,128], index: 6, kind: input, shape index: {}]   ;;  %s1573_s7 = inlined_call_operand.vmem [shape: f32[8,128], index: 7, kind: output, shape index: {}]  }
   0x1   :  { %v1170_v0 = vld [vmem:[%s1566_s1 + $0x38] sm:$0xff]  ;;  %v1169_v4 = vld [vmem:[%s1566_s1 + $0x30] sm:$0xff]  ;;  %v1168_v8 = vld [vmem:[%s1566_s1 + $0x28] sm:$0xff] }
   0x2   :  { %v1178_v1 = vld [vmem:[%s1566_s1 + $0x78] sm:$0xff]  ;;  %558 = vmatpush.bf16.msra.mxu0 %v1170_v0  ;;  %v1177_v5 = vld [vmem:[%s1566_s1 + $0x70] sm:$0xff]  ;;  %v1176_v9 = vld [vmem:[%s1566_s1 + $0x68] sm:$0xff] }
   0x3   :  { %v1186_v2 = vld [vmem:[%s1566_s1 + $0xb8] sm:$0xff]  ;;  %571 = vmatpush.bf16.msra.mxu1 %v1178_v1  ;;  %v1185_v6 = vld [vmem:[%s1566_s1 + $0xb0] sm:$0xff]  ;;  %v1184_v10 = vld [vmem:[%s1566_s1 + $0xa8] sm:$0xff] }
   0x4   :  { %v1194_v3 = vld [vmem:[%s1566_s1 + $0xf8] sm:$0xff]  ;;  %584 = vmatpush.bf16.msra.mxu2 %v1186_v2  ;;  %v1193_v7 = vld [vmem:[%s1566_s1 + $0xf0] sm:$0xff]  ;;  %v1192_v11 = vld [vmem:[%s1566_s1 + $0xe8] sm:$0xff] }
   0x5   :  { %597 = vmatpush.bf16.msra.mxu3 %v1194_v3  ;;  %v1167_v12 = vld [vmem:[%s1566_s1 + $0x20] sm:$0xff]  ;;  %v1166_v16 = vld [vmem:[%s1566_s1 + $0x18] sm:$0xff]  ;;  %v1165_v20 = vld [vmem:[%s1566_s1 + $0x10] sm:$0xff] }
   0x6   :  { %559 = vmatpush.bf16.msra.mxu0 %v1169_v4  ;;  %v1175_v13 = vld [vmem:[%s1566_s1 + $0x60] sm:$0xff]  ;;  %v1174_v17 = vld [vmem:[%s1566_s1 + $0x58] sm:$0xff]  ;;  %v1173_v21 = vld [vmem:[%s1566_s1 + $0x50] sm:$0xff] }
   0x7   :  { %572 = vmatpush.bf16.msra.mxu1 %v1177_v5  ;;  %v1183_v14 = vld [vmem:[%s1566_s1 + $0xa0] sm:$0xff]  ;;  %v1182_v18 = vld [vmem:[%s1566_s1 + $0x98] sm:$0xff]  ;;  %v1181_v22 = vld [vmem:[%s1566_s1 + $0x90] sm:$0xff] }
   0x8   :  { %585 = vmatpush.bf16.msra.mxu2 %v1185_v6  ;;  %v1191_v15 = vld [vmem:[%s1566_s1 + $0xe0] sm:$0xff]  ;;  %v1190_v19 = vld [vmem:[%s1566_s1 + $0xd8] sm:$0xff]  ;;  %v1189_v23 = vld [vmem:[%s1566_s1 + $0xd0] sm:$0xff] }
   0x9   :  { %598 = vmatpush.bf16.msra.mxu3 %v1193_v7  ;;  %v1164_v24 = vld [vmem:[%s1566_s1 + $0x8] sm:$0xff]  ;;  %v1163_v28 = vld [vmem:[%s1566_s1] sm:$0xff]  ;;  %v1202_v32 = vld [vmem:[%s1566_s1 + $0x138] sm:$0xff] }
   0xa   :  { %560 = vmatpush.bf16.msra.mxu0 %v1168_v8  ;;  %v1172_v25 = vld [vmem:[%s1566_s1 + $0x48] sm:$0xff]  ;;  %v1171_v29 = vld [vmem:[%s1566_s1 + $0x40] sm:$0xff]  ;;  %v28_v33 = vld [vmem:[%s1568_s0 + $0x10] sm:$0xff] }
   0xb   :  { %573 = vmatpush.bf16.msra.mxu1 %v1176_v9  ;;  %v1180_v26 = vld [vmem:[%s1566_s1 + $0x88] sm:$0xff]  ;;  %v1179_v30 = vld [vmem:[%s1566_s1 + $0x80] sm:$0xff]  ;;  %v1210_v35 = vld [vmem:[%s1566_s1 + $0x178] sm:$0xff]  ;;  %v36_v40 = vpack.c.bf16 %v28_v33, %v28_v33 }
   0xc   :  { %586 = vmatpush.bf16.msra.mxu2 %v1184_v10  ;;  %v1188_v27 = vld [vmem:[%s1566_s1 + $0xc8] sm:$0xff]  ;;  %v1187_v31 = vld [vmem:[%s1566_s1 + $0xc0] sm:$0xff]  ;;  %v29_v36 = vld [vmem:[%s1568_s0 + $0x18] sm:$0xff] }
   0xd   :  { %599 = vmatpush.bf16.msra.mxu3 %v1192_v11  ;;  %v26_v34 = vld [vmem:[%s1568_s0] sm:$0xff]  ;;  %v27_v37 = vld [vmem:[%s1568_s0 + $0x8] sm:$0xff]  ;;  %v1218_v38 = vld [vmem:[%s1566_s1 + $0x1b8] sm:$0xff]  ;;  %v37_v42 = vpack.c.bf16 %v29_v36, %v29_v36 }
   0xe   :  { %561 = vmatpush.bf16.msra.mxu0 %v1167_v12  ;;  %v1226_v39 = vld [vmem:[%s1566_s1 + $0x1f8] sm:$0xff]  ;;  %v34_v41 = vpack.c.bf16 %v26_v34, %v26_v34  ;;  %v35_v43 = vpack.c.bf16 %v27_v37, %v27_v37  ;;  %v1201_v44 = vld [vmem:[%s1566_s1 + $0x130] sm:$0xff]  ;;  %v1200_v48 = vld [vmem:[%s1566_s1 + $0x128] sm:$0xff] }
   0xf   :  { %574 = vmatpush.bf16.msra.mxu1 %v1175_v13  ;;  %v1209_v45 = vld [vmem:[%s1566_s1 + $0x170] sm:$0xff]  ;;  %v1208_v49 = vld [vmem:[%s1566_s1 + $0x168] sm:$0xff]  ;;  %v1199_v52 = vld [vmem:[%s1566_s1 + $0x120] sm:$0xff] }
  0x10   :  { %587 = vmatpush.bf16.msra.mxu2 %v1183_v14  ;;  %v1217_v46 = vld [vmem:[%s1566_s1 + $0x1b0] sm:$0xff]  ;;  %v1216_v50 = vld [vmem:[%s1566_s1 + $0x1a8] sm:$0xff]  ;;  %v1207_v53 = vld [vmem:[%s1566_s1 + $0x160] sm:$0xff] }
  0x11   :  { %600 = vmatpush.bf16.msra.mxu3 %v1191_v15  ;;  %v1225_v47 = vld [vmem:[%s1566_s1 + $0x1f0] sm:$0xff]  ;;  %v1224_v51 = vld [vmem:[%s1566_s1 + $0x1e8] sm:$0xff]  ;;  %v1215_v54 = vld [vmem:[%s1566_s1 + $0x1a0] sm:$0xff] }
  0x12   :  { %562 = vmatpush.bf16.msra.mxu0 %v1166_v16  ;;  %v1223_v55 = vld [vmem:[%s1566_s1 + $0x1e0] sm:$0xff]  ;;  %v1198_v56 = vld [vmem:[%s1566_s1 + $0x118] sm:$0xff]  ;;  %v1197_v60 = vld [vmem:[%s1566_s1 + $0x110] sm:$0xff] }
  0x13   :  { %575 = vmatpush.bf16.msra.mxu1 %v1174_v17  ;;  %v1206_v57 = vld [vmem:[%s1566_s1 + $0x158] sm:$0xff]  ;;  %v1205_v61 = vld [vmem:[%s1566_s1 + $0x150] sm:$0xff]  ;;  %v1196_v0 = vld [vmem:[%s1566_s1 + $0x108] sm:$0xff] }
  0x14   :  { %588 = vmatpush.bf16.msra.mxu2 %v1182_v18  ;;  %v1214_v58 = vld [vmem:[%s1566_s1 + $0x198] sm:$0xff]  ;;  %v1213_v62 = vld [vmem:[%s1566_s1 + $0x190] sm:$0xff]  ;;  %v1204_v1 = vld [vmem:[%s1566_s1 + $0x148] sm:$0xff] }
  0x15   :  { %601 = vmatpush.bf16.msra.mxu3 %v1190_v19  ;;  %v1222_v59 = vld [vmem:[%s1566_s1 + $0x1d8] sm:$0xff]  ;;  %v1221_v63 = vld [vmem:[%s1566_s1 + $0x1d0] sm:$0xff]  ;;  %v1212_v2 = vld [vmem:[%s1566_s1 + $0x188] sm:$0xff] }
  0x16   :  { %563 = vmatpush.bf16.msra.mxu0 %v1165_v20  ;;  %v1220_v3 = vld [vmem:[%s1566_s1 + $0x1c8] sm:$0xff]  ;;  %v1195_v4 = vld [vmem:[%s1566_s1 + $0x100] sm:$0xff]  ;;  %v32_v10 = vld [vmem:[%s1568_s0 + $0x30] sm:$0xff] }
  0x17   :  { %576 = vmatpush.bf16.msra.mxu1 %v1173_v21  ;;  %v1203_v5 = vld [vmem:[%s1566_s1 + $0x140] sm:$0xff]  ;;  %v31_v8 = vld [vmem:[%s1568_s0 + $0x28] sm:$0xff]  ;;  %v33_v11 = vld [vmem:[%s1568_s0 + $0x38] sm:$0xff]  ;;  %v40_v14 = vpack.c.bf16 %v32_v10, %v32_v10 }
  0x18   :  { %589 = vmatpush.bf16.msra.mxu2 %v1181_v22  ;;  %v1211_v6 = vld [vmem:[%s1566_s1 + $0x180] sm:$0xff]  ;;  %v39_v13 = vpack.c.bf16 %v31_v8, %v31_v8  ;;  %v41_v15 = vpack.c.bf16 %v33_v11, %v33_v11  ;;  %v1234_v16 = vld [vmem:[%s1570_s3 + $0x38] sm:$0xff]  ;;  %v1233_v17 = vld [vmem:[%s1570_s3 + $0x30] sm:$0xff] }
  0x19   :  { %602 = vmatpush.bf16.msra.mxu3 %v1189_v23  ;;  %v30_v7 = vld [vmem:[%s1568_s0 + $0x20] sm:$0xff]  ;;  %v1232_v18 = vld [vmem:[%s1570_s3 + $0x28] sm:$0xff]  ;;  %v1230_v20 = vld [vmem:[%s1570_s3 + $0x18] sm:$0xff] }
  0x1a   :  { %564 = vmatpush.bf16.msra.mxu0 %v1164_v24  ;;  %v1219_v9 = vld [vmem:[%s1566_s1 + $0x1c0] sm:$0xff]  ;;  %v38_v12 = vpack.c.bf16 %v30_v7, %v30_v7  ;;  %v1229_v22 = vld [vmem:[%s1570_s3 + $0x10] sm:$0xff]  ;;  %v1228_v24 = vld [vmem:[%s1570_s3 + $0x8] sm:$0xff] }
  0x1b   :  { %577 = vmatpush.bf16.msra.mxu1 %v1172_v25  ;;  %v1231_v19 = vld [vmem:[%s1570_s3 + $0x20] sm:$0xff]  ;;  %v1241_v34 = vld [vmem:[%s1571_s5 + $0x30] sm:$0xff]  ;;  %v1240_v36 = vld [vmem:[%s1571_s5 + $0x28] sm:$0xff] }
  0x1c   :  { %590 = vmatpush.bf16.msra.mxu2 %v1180_v26 }
  0x1d   :  { %603 = vmatpush.bf16.msra.mxu3 %v1188_v27 }
  0x1e   :  { %565 = vmatpush.bf16.msra.mxu0 %v1163_v28  ;;  %v1227_v28 = vld [vmem:[%s1570_s3] sm:$0xff] }
  0x1f   :  { %578 = vmatpush.bf16.msra.mxu1 %v1171_v29 }
  0x20   :  { %591 = vmatpush.bf16.msra.mxu2 %v1179_v30  ;;  %v1243_v30 = vld [vmem:[%s1567_s2] ss:$0 sm:$0xff] }
  0x21   :  { %604 = vmatpush.bf16.msra.mxu3 %v1187_v31  ;;  %566 = vmatmul.bf16.vlgmr.msra.gmra.mxu0 %v34_v41  ;;  %v1242_v31 = vld [vmem:[%s1571_s5 + $0x38] sm:$0xff] }
  0x22   :  { %610 = vmatpush.bf16.msrb.mxu0 %v1202_v32  ;;  %579 = vmatmul.bf16.vlgmr.msra.gmra.mxu1 %v35_v43 }
  0x23   :  { %623 = vmatpush.bf16.msrb.mxu1 %v1210_v35  ;;  %592 = vmatmul.bf16.vlgmr.msra.gmra.mxu2 %v36_v40  ;;  %v1238_v40 = vld [vmem:[%s1571_s5 + $0x18] sm:$0xff] }
  0x24   :  { %636 = vmatpush.bf16.msrb.mxu2 %v1218_v38  ;;  %605 = vmatmul.bf16.vlgmr.msra.gmra.mxu3 %v37_v42  ;;  %v1239_v38 = vld [vmem:[%s1571_s5 + $0x20] sm:$0xff] }
  0x25   :  { %649 = vmatpush.bf16.msrb.mxu3 %v1226_v39 }
  0x26   :  { %611 = vmatpush.bf16.msrb.mxu0 %v1201_v44 }
  0x27   :  { %624 = vmatpush.bf16.msrb.mxu1 %v1209_v45  ;;  %v1237_v45 = vld [vmem:[%s1571_s5 + $0x10] sm:$0xff] }
  0x28   :  { %637 = vmatpush.bf16.msrb.mxu2 %v1217_v46 }
  0x29   :  { %650 = vmatpush.bf16.msrb.mxu3 %v1225_v47 }
  0x2a   :  { %612 = vmatpush.bf16.msrb.mxu0 %v1200_v48 }
  0x2b   :  { %625 = vmatpush.bf16.msrb.mxu1 %v1208_v49 }
  0x2c   :  { %638 = vmatpush.bf16.msrb.mxu2 %v1216_v50 }
  0x2d   :  { %651 = vmatpush.bf16.msrb.mxu3 %v1224_v51 }
  0x2e   :  { %613 = vmatpush.bf16.msrb.mxu0 %v1199_v52 }
  0x2f   :  { %626 = vmatpush.bf16.msrb.mxu1 %v1207_v53 }
  0x30   :  { %639 = vmatpush.bf16.msrb.mxu2 %v1215_v54 }
  0x31   :  { %652 = vmatpush.bf16.msrb.mxu3 %v1223_v55 }
  0x32   :  { %614 = vmatpush.bf16.msrb.mxu0 %v1198_v56 }
  0x33   :  { %627 = vmatpush.bf16.msrb.mxu1 %v1206_v57  ;;  %v1236_v57 = vld [vmem:[%s1571_s5 + $0x8] sm:$0xff] }
  0x34   :  { %640 = vmatpush.bf16.msrb.mxu2 %v1214_v58  ;;  %v1235_v58 = vld [vmem:[%s1571_s5] sm:$0xff] }
  0x35   :  { %653 = vmatpush.bf16.msrb.mxu3 %v1222_v59  ;;  %v1244_v59 = vld [vmem:[%s1569_s4] ss:$0 sm:$0xff] }
  0x36   :  { %615 = vmatpush.bf16.msrb.mxu0 %v1197_v60 }
  0x37   :  { %628 = vmatpush.bf16.msrb.mxu1 %v1205_v61 }
  0x38   :  { %641 = vmatpush.bf16.msrb.mxu2 %v1213_v62 }
  0x39   :  { %654 = vmatpush.bf16.msrb.mxu3 %v1221_v63 }
  0x3a   :  { %616 = vmatpush.bf16.msrb.mxu0 %v1196_v0 }
  0x3b   :  { %629 = vmatpush.bf16.msrb.mxu1 %v1204_v1  ;;  %v1245_v1 = vld [vmem:[%s1572_s6] ss:$0 sm:$0xff] }
  0x3c   :  { %642 = vmatpush.bf16.msrb.mxu2 %v1212_v2 }
  0x3d   :  { %655 = vmatpush.bf16.msrb.mxu3 %v1220_v3 }
  0x3e   :  { %617 = vmatpush.bf16.msrb.mxu0 %v1195_v4 }
  0x3f   :  { %630 = vmatpush.bf16.msrb.mxu1 %v1203_v5 }
  0x40   :  { %643 = vmatpush.bf16.msrb.mxu2 %v1211_v6 }
  0x41   :  { %656 = vmatpush.bf16.msrb.mxu3 %v1219_v9  ;;  %618 = vmatmul.bf16.vlgmr.msrb.gmra.mxu0 %v38_v12 }
  0x42   :  { %631 = vmatmul.bf16.vlgmr.msrb.gmra.mxu1 %v39_v13  ;;  %732 = vmatpush.bf16.msra.mxu0 %v1234_v16 }
  0x43   :  { %644 = vmatmul.bf16.vlgmr.msrb.gmra.mxu2 %v40_v14  ;;  %815 = vmatpush.bf16.msra.mxu1 %v1242_v31 }
  0x44   :  { %657 = vmatmul.bf16.vlgmr.msrb.gmra.mxu3 %v41_v15 }
  0x46   :  { %733 = vmatpush.bf16.msra.mxu0 %v1233_v17 }
  0x47   :  { %816 = vmatpush.bf16.msra.mxu1 %v1241_v34 }
  0x4a   :  { %734 = vmatpush.bf16.msra.mxu0 %v1232_v18 }
  0x4b   :  { %817 = vmatpush.bf16.msra.mxu1 %v1240_v36 }
  0x4e   :  { %735 = vmatpush.bf16.msra.mxu0 %v1231_v19 }
  0x4f   :  { %818 = vmatpush.bf16.msra.mxu1 %v1239_v38 }
  0x52   :  { %736 = vmatpush.bf16.msra.mxu0 %v1230_v20 }
  0x53   :  { %819 = vmatpush.bf16.msra.mxu1 %v1238_v40 }
  0x56   :  { %737 = vmatpush.bf16.msra.mxu0 %v1229_v22 }
  0x57   :  { %820 = vmatpush.bf16.msra.mxu1 %v1237_v45 }
  0x5a   :  { %738 = vmatpush.bf16.msra.mxu0 %v1228_v24 }
  0x5b   :  { %821 = vmatpush.bf16.msra.mxu1 %v1236_v57 }
  0x5e   :  { %739 = vmatpush.bf16.msra.mxu0 %v1227_v28 }
  0x5f   :  { %822 = vmatpush.bf16.msra.mxu1 %v1235_v58 }
  0x9e   :  { %v567_v21 = vpop.f32.mrf.mxu0 }
  0x9f   :  { %v580_v23 = vpop.f32.mrf.mxu1  ;;  %v568_v35 = vadd.f32 %v1243_v30, %v567_v21 }
  0xa1   :  { %v581_v37 = vadd.f32 %v580_v23, %v568_v35 }
  0xa6   :  { %v593_v25 = vpop.f32.mrf.mxu2  ;;  %v569_v27 = vpop.f32.mrf.mxu0 }
  0xa7   :  { %v606_v26 = vpop.f32.mrf.mxu3  ;;  %v582_v29 = vpop.f32.mrf.mxu1  ;;  %v594_v39 = vadd.f32 %v593_v25, %v581_v37 }
  0xa9   :  { %v607_v41 = vadd.f32 %v606_v26, %v594_v39 }
  0xae   :  { %v595_v32 = vpop.f32.mrf.mxu2 }
  0xaf   :  { %v608_v33 = vpop.f32.mrf.mxu3 }
  0xbe   :  { %v619_v42 = vpop.f32.mrf.mxu0 }
  0xbf   :  { %v632_v43 = vpop.f32.mrf.mxu1  ;;  %v620_v44 = vadd.f32 %v619_v42, %v607_v41 }
  0xc1   :  { %v633_v46 = vadd.f32 %v632_v43, %v620_v44 }
  0xc6   :  { %v645_v47 = vpop.f32.mrf.mxu2  ;;  %v621_v50 = vpop.f32.mrf.mxu0 }
  0xc7   :  { %v658_v48 = vpop.f32.mrf.mxu3  ;;  %v646_v49 = vadd.f32 %v645_v47, %v633_v46  ;;  %v634_v51 = vpop.f32.mrf.mxu1 }
  0xc9   :  { %v659_v52 = vadd.f32 %v658_v48, %v646_v49 }
  0xcb   :  { %v662_v53 = vmax.f32 %v659_v52, 0.0 }
  0xcd   :  { %v663_v54 = vpack.c.bf16 %v662_v53, %v662_v53 }
  0xce   :  { %v647_v55 = vpop.f32.mrf.mxu2 }
  0xcf   :  { %v660_v56 = vpop.f32.mrf.mxu3  ;;  %740 = vmatmul.bf16.vlgmr.msra.gmra.mxu0 %v663_v54 }
 0x14c   :  { %v741_v60 = vpop.f32.mrf.mxu0 }
 0x14d   :  { %v742_v61 = vadd.f32 %v1244_v59, %v741_v60 }
 0x14f   :  { %v745_v62 = vmax.f32 %v742_v61, 0.0 }
 0x151   :  { %v746_v63 = vpack.c.bf16 %v745_v62, %v745_v62 }
 0x153   :  { %823 = vmatmul.bf16.vlgmr.msra.gmra.mxu1 %v746_v63 }
 0x154   :  { %v743_v0 = vpop.f32.mrf.mxu0 }
 0x1d0   :  { %v824_v2 = vpop.f32.mrf.mxu1 }
 0x1d1   :  { %v825_v3 = vadd.f32 %v1245_v1, %v824_v2 }
 0x1d3   :  { %828 = vmax.xlane.f32.xlu0 %v825_v3 }
 0x1d8   :  { %v826_v4 = vpop.f32.mrf.mxu1 }
 0x246   :  { %v829_v5 = vpop.xlane.xlu0 %828 }
 0x247   :  { %v830_v6 = vsub.f32 %v825_v3, %v829_v5 }
 0x249   :  { %v831_v7 = vmul.f32 1.442695, %v830_v6 }
 0x24b   :  { %1246 = vpow2.f32 %v831_v7 }
 0x251   :  { %v1247_v8 = vpop.eup %1246 }
 0x252   :  { %833 = vadd.xlane.f32.xlu0 %v1247_v8 }
 0x2c5   :  { %v834_v9 = vpop.xlane.xlu0 %833 }
 0x2c6   :  { %1248 = vlog2.f32 %v834_v9 }
 0x2cc   :  { %v1249_v10 = vpop.eup %1248 }
 0x2cd   :  { %v836_v11 = vmul.f32 0.6931472, %v1249_v10 }
 0x2cf   :  { %v837_v12 = vsub.f32 %v830_v6, %v836_v11 }
 0x2d1   :  { %838 = vst [vmem:[%s1573_s7] sm:$0xff] %v837_v12 }

</bundles_post_ra>
